<compile_context>
chip_gen: v6e
topology: v6e:2x2x1
jax: 0.10.0
libtpu: 0.0.40
codegen_flags: <defaults>
</compile_context>

<pallas_src>
import functools

import jax
import jax.numpy as jnp
from jax.experimental import pallas as pl
from jax.experimental.pallas import tpu as pltpu


def _round_up(x: int, m: int) -> int:
    return (x + m - 1) // m * m


def _make_kernel(dense_size: int, sparse_size: int, sparse_key_size: int,
                 num_hiddens: int, dense_activation: str):
    D, S, K, H = dense_size, sparse_size, sparse_key_size, num_hiddens
    DH, SH, SK = D * H, S * H, S * K

    def kernel(xd_ref,   # VMEM (tb, D)    f32   dense features
               xs_ref,   # VMEM (tb, S)    f32   sparse indices (exact small ints)
               wbd_ref,  # VMEM (D, D*H)   f32   block-diagonal dense table
               rep_ref,  # VMEM (S, S*K)   f32   slot-replication matrix
               key_ref,  # VMEM (1, S*K)   f32   per-lane key id (lane%K)
               tbd_ref,  # VMEM (S*K, S*H) f32   block-diagonal sparse table
               col_ref,  # VMEM (1, F*H)   f32   flattened column embedding
               out_ref): # VMEM (tb, F*H)  f32
        hi = jax.lax.Precision.HIGHEST

        # -------- dense path (MXU): out[:, i*H+h] = act(x_d[:, i] * W[i, h]) --------
        dense = jnp.dot(xd_ref[...], wbd_ref[...],
                        preferred_element_type=jnp.float32, precision=hi)   # (tb, DH)
        if dense_activation == "relu":
            dense = jnp.maximum(dense, 0.0)
        elif dense_activation == "sigmoid":
            dense = jax.nn.sigmoid(dense)
        else:  # tanh
            dense = jnp.tanh(dense)

        # -------- sparse path (MXU): out[:, D*H + s*H + h] = table[x_s[:, s], h] -----
        # Slot-replicate the indices across the S*K lanes via a tiny matmul (no XLU
        # single-lane broadcasts), build the one-hot with one compare, then gather
        # with a block-diagonal one-hot matmul.  OOB indices produce all-zero rows.
        idx_rep = jnp.dot(xs_ref[...], rep_ref[...],
                          preferred_element_type=jnp.float32, precision=hi)  # (tb, SK)
        one_hot = (idx_rep == key_ref[...]).astype(jnp.float32)              # (tb, SK)
        sparse = jnp.dot(one_hot, tbd_ref[...],
                         preferred_element_type=jnp.float32, precision=hi)   # (tb, SH)

        # Single contiguous lane-dense store of the full tile.
        out_ref[...] = jnp.concatenate([dense, sparse], axis=1) + col_ref[...]

    return kernel


@functools.partial(jax.jit, static_argnames=("dense_activation", "block_rows"))
def input_embedding(x_dense, x_sparse, w_dense, sparse_table, col_embed,
                    dense_activation: str = "relu", block_rows: int = 2048):
    if dense_activation not in ("relu", "sigmoid", "tanh"):
        raise ValueError(f"Unknown dense activation function: {dense_activation}")

    B, D = x_dense.shape
    _, S = x_sparse.shape
    K, H = sparse_table.shape
    F = D + S
    DH, SH, SK, FH = D * H, S * H, S * K, F * H

    # Batch tile: multiple of 8 sublanes, capped at block_rows; choose it so the
    # parallel grid has >= 2 steps whenever the batch allows (v7x has 2 TCs).
    tb = max(8, min(block_rows, _round_up((B + 1) // 2, 8)))
    nb = pl.cdiv(B, tb)   # partial edge block handles B % tb (and B < tb)

    xd = x_dense.astype(jnp.float32)
    xs = x_sparse.astype(jnp.float32)   # indices < 2^24 are exact in f32

    # Wrapper-side layout plumbing (tiny, param-sized): block-diagonal operands so
    # both paths ride the MXU and the kernel output is lane-dense.
    eye_d = jnp.eye(D, dtype=jnp.float32)
    wbd = (eye_d[:, :, None] * w_dense.astype(jnp.float32)[None, :, :]).reshape(D, DH)
    rep = jnp.repeat(jnp.eye(S, dtype=jnp.float32), K, axis=1)                 # (S, SK)
    key_map = jnp.tile(jnp.arange(K, dtype=jnp.float32), (S,)).reshape(1, SK)  # (1, SK)
    eye_s = jnp.eye(S, dtype=jnp.float32)
    tbd = (eye_s[:, None, :, None] *
           sparse_table.astype(jnp.float32)[None, :, None, :]).reshape(SK, SH)
    col_flat = col_embed.astype(jnp.float32).reshape(1, FH)

    kernel = _make_kernel(D, S, K, H, dense_activation)

    out_flat = pl.pallas_call(
        kernel,
        grid=(nb,),
        in_specs=[
            pl.BlockSpec((tb, D), lambda b: (b, 0)),
            pl.BlockSpec((tb, S), lambda b: (b, 0)),
            pl.BlockSpec((D, DH), lambda b: (0, 0)),
            pl.BlockSpec((S, SK), lambda b: (0, 0)),
            pl.BlockSpec((1, SK), lambda b: (0, 0)),
            pl.BlockSpec((SK, SH), lambda b: (0, 0)),
            pl.BlockSpec((1, FH), lambda b: (0, 0)),
        ],
        out_specs=pl.BlockSpec((tb, FH), lambda b: (b, 0)),
        out_shape=jax.ShapeDtypeStruct((B, FH), jnp.float32),
        compiler_params=pltpu.CompilerParams(dimension_semantics=("parallel",)),
    )(xd, xs, wbd, rep, key_map, tbd, col_flat)

    return out_flat.reshape(B, F, H)


def _reference(x_dense, x_sparse, w_dense, sparse_table, col_embed, dense_activation="relu"):
    dense = x_dense[:, :, None] * w_dense[None, :, :]
    if dense_activation == "relu":
        dense = jnp.maximum(dense, 0.0)
    elif dense_activation == "sigmoid":
        dense = jax.nn.sigmoid(dense)
    else:
        dense = jnp.tanh(dense)
    sparse = sparse_table[x_sparse]
    return jnp.concatenate([dense, sparse], axis=1) + col_embed[None, :, :]


if __name__ == "__main__":
    # Module hyperparameters (small, consistent with the forward pass).
    B = 2
    dense_size = 4
    sparse_size = 4
    sparse_key_size = 16
    num_hiddens = 32
    num_features = dense_size + sparse_size

    key = jax.random.PRNGKey(0)
    k1, k2, k3, k4, k5 = jax.random.split(key, 5)

    # Deterministic parameter init (nn.Embedding.weight ~ N(0,1); col_embed ~ randn).
    w_dense = jax.random.normal(k1, (dense_size, num_hiddens), dtype=jnp.float32)
    sparse_table = jax.random.normal(k2, (sparse_key_size, num_hiddens), dtype=jnp.float32)
    col_embed = jax.random.normal(k3, (num_features, num_hiddens), dtype=jnp.float32)

    # Inputs.
    x_dense = jax.random.normal(k4, (B, dense_size), dtype=jnp.float32)
    x_sparse = jax.random.randint(k5, (B, sparse_size), 0, sparse_key_size, dtype=jnp.int32)

    out = input_embedding(x_dense, x_sparse, w_dense, sparse_table, col_embed,
                          dense_activation="relu")
    out = jax.block_until_ready(out)

    ref = _reference(x_dense, x_sparse, w_dense, sparse_table, col_embed, "relu")
    assert out.shape == (B, num_features, num_hiddens)
    assert jnp.allclose(out, ref, atol=1e-5, rtol=1e-5), "mismatch vs reference"

    print("KERNEL_OK")
</pallas_src>

<mosaic_0001>
module attributes {stable_mosaic.version = 11 : i64} {
  func.func @kernel(%arg0: i32, %arg1: memref<8x4xf32, #tpu.memory_space<vmem>>, %arg2: memref<8x4xf32, #tpu.memory_space<vmem>>, %arg3: memref<4x128xf32, #tpu.memory_space<vmem>>, %arg4: memref<4x64xf32, #tpu.memory_space<vmem>>, %arg5: memref<1x64xf32, #tpu.memory_space<vmem>>, %arg6: memref<64x128xf32, #tpu.memory_space<vmem>>, %arg7: memref<1x256xf32, #tpu.memory_space<vmem>>, %arg8: memref<8x256xf32, #tpu.memory_space<vmem>>) attributes {dimension_semantics = [#tpu.dimension_semantics<parallel>], iteration_bounds = array<i64: 1>, scalar_prefetch = 0 : i64, scratch_operands = 0 : i64, tpu.core_type = #tpu.core_type<tc>, window_params = [{transform_indices = @transform_0, window_bounds = array<i64: 8, 4>}, {transform_indices = @transform_1, window_bounds = array<i64: 8, 4>}, {pipeline_mode = #tpu.pipeline_mode<synchronous>, transform_indices = @transform_2, window_bounds = array<i64: 4, 128>}, {pipeline_mode = #tpu.pipeline_mode<synchronous>, transform_indices = @transform_3, window_bounds = array<i64: 4, 64>}, {pipeline_mode = #tpu.pipeline_mode<synchronous>, transform_indices = @transform_4, window_bounds = array<i64: 1, 64>}, {pipeline_mode = #tpu.pipeline_mode<synchronous>, transform_indices = @transform_5, window_bounds = array<i64: 64, 128>}, {pipeline_mode = #tpu.pipeline_mode<synchronous>, transform_indices = @transform_6, window_bounds = array<i64: 1, 256>}, {transform_indices = @transform_7, window_bounds = array<i64: 8, 256>}]} {
    %c0 = arith.constant 0 : index
    %c0_0 = arith.constant 0 : index
    %0 = vector.load %arg1[%c0, %c0_0] : memref<8x4xf32, #tpu.memory_space<vmem>>, vector<8x4xf32>
    %c0_1 = arith.constant 0 : index
    %c0_2 = arith.constant 0 : index
    %1 = vector.load %arg3[%c0_1, %c0_2] : memref<4x128xf32, #tpu.memory_space<vmem>>, vector<4x128xf32>
    %cst = arith.constant dense<0.000000e+00> : vector<8x128xf32>
    %2 = tpu.matmul %0, %1, %cst {dimension_numbers = #tpu.dot_dimension_numbers<[1], [0], [0], [1], [0, 0, 1, 1], [], []>, precision = #tpu.contract_precision<fp32>} : vector<8x4xf32>, vector<4x128xf32>, vector<8x128xf32> -> vector<8x128xf32>
    %cst_3 = arith.constant 0.000000e+00 : f32
    %3 = vector.broadcast %cst_3 : f32 to vector<8x128xf32>
    %4 = arith.maximumf %2, %3 : vector<8x128xf32>
    %c0_4 = arith.constant 0 : index
    %c0_5 = arith.constant 0 : index
    %5 = vector.load %arg2[%c0_4, %c0_5] : memref<8x4xf32, #tpu.memory_space<vmem>>, vector<8x4xf32>
    %c0_6 = arith.constant 0 : index
    %c0_7 = arith.constant 0 : index
    %6 = vector.load %arg4[%c0_6, %c0_7] : memref<4x64xf32, #tpu.memory_space<vmem>>, vector<4x64xf32>
    %cst_8 = arith.constant dense<0.000000e+00> : vector<8x64xf32>
    %7 = tpu.matmul %5, %6, %cst_8 {dimension_numbers = #tpu.dot_dimension_numbers<[1], [0], [0], [1], [0, 0, 1, 1], [], []>, precision = #tpu.contract_precision<fp32>} : vector<8x4xf32>, vector<4x64xf32>, vector<8x64xf32> -> vector<8x64xf32>
    %c0_9 = arith.constant 0 : index
    %c0_10 = arith.constant 0 : index
    %8 = vector.load %arg5[%c0_9, %c0_10] : memref<1x64xf32, #tpu.memory_space<vmem>>, vector<1x64xf32>
    %9 = vector.broadcast %8 : vector<1x64xf32> to vector<8x64xf32>
    %10 = arith.cmpf oeq, %7, %9 : vector<8x64xf32>
    %11 = arith.extui %10 : vector<8x64xi1> to vector<8x64xi32>
    %12 = arith.sitofp %11 : vector<8x64xi32> to vector<8x64xf32>
    %c0_11 = arith.constant 0 : index
    %c0_12 = arith.constant 0 : index
    %13 = vector.load %arg6[%c0_11, %c0_12] : memref<64x128xf32, #tpu.memory_space<vmem>>, vector<64x128xf32>
    %cst_13 = arith.constant dense<0.000000e+00> : vector<8x128xf32>
    %14 = tpu.matmul %12, %13, %cst_13 {dimension_numbers = #tpu.dot_dimension_numbers<[1], [0], [0], [1], [0, 0, 1, 1], [], []>, precision = #tpu.contract_precision<fp32>} : vector<8x64xf32>, vector<64x128xf32>, vector<8x128xf32> -> vector<8x128xf32>
    %15 = tpu.concatenate %4, %14 in 1 : vector<8x128xf32>, vector<8x128xf32> -> vector<8x256xf32>
    %c0_14 = arith.constant 0 : index
    %c0_15 = arith.constant 0 : index
    %16 = vector.load %arg7[%c0_14, %c0_15] : memref<1x256xf32, #tpu.memory_space<vmem>>, vector<1x256xf32>
    %17 = vector.broadcast %16 : vector<1x256xf32> to vector<8x256xf32>
    %18 = arith.addf %15, %17 : vector<8x256xf32>
    %c0_16 = arith.constant 0 : index
    %c0_17 = arith.constant 0 : index
    %19 = vector.load %arg8[%c0_16, %c0_17] : memref<8x256xf32, #tpu.memory_space<vmem>>, vector<8x256xf32>
    tpu.vector_store %arg8[%c0_16, %c0_17], %18 {strides = array<i32>} : memref<8x256xf32, #tpu.memory_space<vmem>>, vector<8x256xf32>,
    return
  }
  func.func @transform_0(%arg0: i32) -> (i32, i32) {
    %c0_i32 = arith.constant 0 : i32
    %c0_i32_0 = arith.constant 0 : i32
    return %arg0, %c0_i32 : i32, i32
  }
  func.func @transform_1(%arg0: i32) -> (i32, i32) {
    %c0_i32 = arith.constant 0 : i32
    %c0_i32_0 = arith.constant 0 : i32
    return %arg0, %c0_i32 : i32, i32
  }
  func.func @transform_2(%arg0: i32) -> (i32, i32) {
    %c0_i32 = arith.constant 0 : i32
    %c0_i32_0 = arith.constant 0 : i32
    %c0_i32_1 = arith.constant 0 : i32
    return %c0_i32, %c0_i32_0 : i32, i32
  }
  func.func @transform_3(%arg0: i32) -> (i32, i32) {
    %c0_i32 = arith.constant 0 : i32
    %c0_i32_0 = arith.constant 0 : i32
    %c0_i32_1 = arith.constant 0 : i32
    return %c0_i32, %c0_i32_0 : i32, i32
  }
  func.func @transform_4(%arg0: i32) -> (i32, i32) {
    %c0_i32 = arith.constant 0 : i32
    %c0_i32_0 = arith.constant 0 : i32
    %c0_i32_1 = arith.constant 0 : i32
    return %c0_i32, %c0_i32_0 : i32, i32
  }
  func.func @transform_5(%arg0: i32) -> (i32, i32) {
    %c0_i32 = arith.constant 0 : i32
    %c0_i32_0 = arith.constant 0 : i32
    %c0_i32_1 = arith.constant 0 : i32
    return %c0_i32, %c0_i32_0 : i32, i32
  }
  func.func @transform_6(%arg0: i32) -> (i32, i32) {
    %c0_i32 = arith.constant 0 : i32
    %c0_i32_0 = arith.constant 0 : i32
    %c0_i32_1 = arith.constant 0 : i32
    return %c0_i32, %c0_i32_0 : i32, i32
  }
  func.func @transform_7(%arg0: i32) -> (i32, i32) {
    %c0_i32 = arith.constant 0 : i32
    %c0_i32_0 = arith.constant 0 : i32
    return %arg0, %c0_i32 : i32, i32
  }
}

</mosaic_0001>

<bundles_post_ra>
// kernel: tile.9
= control target key start
LH: loop header
LB: loop body
LE: loop exit
PB: predicated region body
PF: predicated region fallthrough
CT: control target
= control target key end

     0   :  { %vm8_vm0 = vcmask 130048   ;;  %s40_s8 = smov 16   ;;  %s41_s9 = smov 32   ;;  %vm14_vm1 = vcmask 523648   ;;  %vm20_vm2 = vcmask 392448   ;;  %vm26_vm3 = vcmask 261248   ;;  %s58_s0 = inlined_call_operand.vmem [shape: f32[4,16], index: 0, kind: input, shape index: {}]   ;;  %s59_s1 = inlined_call_operand.vmem [shape: f32[1,64], index: 1, kind: output, shape index: {}]  }
   0x1   :  { %v5_v0 = vld [vmem:[%s58_s0] sm:$0xf]  ;;  %s39_s0 = smov 48  }
   0x2   :  { %6 = vst [vmem:[#allocation1] sm:$0xf] %v5_v0 }
   0x9   :  { %v11_v1 = vld [vmem:[#allocation1 + $0x3] sm:$0x1]   ;;  %v23_v2 = vld [vmem:[#allocation1 + $0x1] sm:$0x1]   ;;  %v7_v3 = vld [vmem:[#allocation1] sm:$0x1]  }
   0xa   :  { %12 = vrot.lane.b32.xlu0 %v11_v1, %s39_s0  ;;  %24 = vrot.lane.b32.xlu1 %v23_v2, %s40_s8  ;;  %v17_v4 = vld [vmem:[#allocation1 + $0x2] sm:$0x1]   ;;  %9 = vst.msk [vmem:[#allocation0] sm:$0x1] %vm8_vm0, %v7_v3  }
   0xe   :  { %18 = vrot.lane.b32.xlu0 %v17_v4, %s41_s9 }
  0x7c   :  { %v13_v5 = vpop.permute.xlu0 %12   ;;  %v25_v6 = vpop.permute.xlu1 %24  }
  0x7d   :  { %15 = vst.msk [vmem:[#allocation0] sm:$0x1] %vm14_vm1, %v13_v5  }
  0x80   :  { %v19_v7 = vpop.permute.xlu0 %18  }
  0x81   :  { %21 = vst.msk [vmem:[#allocation0] sm:$0x1] %vm20_vm2, %v19_v7  }
  0x82   :  { %27 = vst.msk [vmem:[#allocation0] sm:$0x1] %vm26_vm3, %v25_v6  }
  0x89   :  { %v32_v8 = vld [vmem:[#allocation0] sm:$0x1] }
  0x8a   :  { %35 = vst [vmem:[%s59_s1] sm:$0x1] %v32_v8 }

// kernel: input_embedding.1
= control target key start
LH: loop header
LB: loop body
LE: loop exit
PB: predicated region body
PF: predicated region fallthrough
CT: control target
= control target key end

     0   :  { %vm32_vm0 = vcmask 1043456   ;;  %v1841_v2 = vmov 0.0   ;;  %vm1842_vm1 = vmmov 0   ;;  %vm28_vm2 = vcmask 31744   ;;  %s2158_s0 = inlined_call_operand.vmem [shape: f32[2,4], index: 0, kind: input, shape index: {}]   ;;  %s2159_s1 = inlined_call_operand.vmem [shape: f32[2,4], index: 1, kind: input, shape index: {}]   ;;  %s2160_s2 = inlined_call_operand.vmem [shape: f32[4,128], index: 2, kind: input, shape index: {}]   ;;  %s2161_s3 = inlined_call_operand.vmem [shape: f32[4,64], index: 3, kind: input, shape index: {}]   ;;  %s2162_s4 = inlined_call_operand.vmem [shape: f32[1,64], index: 4, kind: input, shape index: {}]   ;;  %s2163_s5 = inlined_call_operand.vmem [shape: f32[64,128], index: 5, kind: input, shape index: {}]   ;;  %s2164_s6 = inlined_call_operand.vmem [shape: f32[1,256], index: 6, kind: input, shape index: {}]   ;;  %s2165_s7 = inlined_call_operand.vmem [shape: f32[2,256], index: 7, kind: output, shape index: {}]  }
   0x1   :  { %v27_v0 = vld [vmem:[%s2160_s2] sm:$0xf]  ;;  %1664 = vmatprep.subr.mxu0 %v1841_v2  ;;  %1666 = vmatprep.mubr.msk.f32.mxu0 %vm1842_vm1, %v1841_v2  ;;  %v954_v29 = vld [vmem:[%s2163_s5 + $0x38] sm:$0xff]  ;;  %v953_v31 = vld [vmem:[%s2163_s5 + $0x30] sm:$0xff]  ;;  %vm955_vm3 = vcmask 523264  }
   0x2   :  { %v26_v1 = vld [vmem:[%s2158_s0] sm:$0xff]  ;;  %v34_v3 = vsel %vm32_vm0, %v27_v0, 0  ;;  %1669 = vmatprep.subr.mxu1 %v1841_v2  ;;  %1671 = vmatprep.mubr.msk.f32.mxu1 %vm1842_vm1, %v1841_v2  ;;  %v1940_v30 = vand.u32 4294901760, %v954_v29  ;;  %v1948_v33 = vand.u32 4294901760, %v953_v31  ;;  %v952_v34 = vld [vmem:[%s2163_s5 + $0x28] sm:$0xff]  ;;  %v950_v43 = vld [vmem:[%s2163_s5 + $0x18] sm:$0xff] }
   0x3   :  { %v483_v4 = vld [vmem:[%s2159_s1] sm:$0xff]  ;;  %v67_v6 = vand.u32 4294901760, %v34_v3  ;;  %v30_v7 = vsel %vm28_vm2, %v26_v1, 0  ;;  %v1959_v37 = vand.u32 4294901760, %v952_v34  ;;  %v1987_v48 = vand.u32 4294901760, %v950_v43  ;;  %v949_v49 = vld [vmem:[%s2163_s5 + $0x10] sm:$0xff] }
   0x4   :  { %v484_v5 = vld [vmem:[%s2161_s3] sm:$0xf]  ;;  %v486_v8 = vsel %vm28_vm2, %v483_v4, 0  ;;  %v102_v10 = vand.u32 4294901760, %v30_v7  ;;  %v1946_v32 = vsub.f32 %v954_v29, %v1940_v30  ;;  %v1957_v36 = vsub.f32 %v953_v31, %v1948_v33  ;;  %v948_v55 = vld [vmem:[%s2163_s5 + $0x8] sm:$0xff] }
   0x5   :  { %v489_v9 = vsel %vm32_vm0, %v484_v5, 0  ;;  %1665 = vmatpush3.msra.mxu0 %v67_v6  ;;  %v144_v12 = vsub.f32 %v34_v3, %v67_v6  ;;  %v557_v14 = vand.u32 4294901760, %v486_v8  ;;  %v951_v38 = vld [vmem:[%s2163_s5 + $0x20] sm:$0xff]  ;;  %v1971_v41 = vsub.f32 %v952_v34, %v1959_v37 }
   0x6   :  { %v522_v11 = vand.u32 4294901760, %v489_v9  ;;  %1674 = vmatprep.subr.mxu0 %v1841_v2  ;;  %v103_v13 = vsub.f32 %v30_v7, %v102_v10  ;;  %v1061_v35 = vand.u32 4294901760, %v1946_v32  ;;  %v1068_v40 = vand.u32 4294901760, %v1957_v36  ;;  %v947_v61 = vld [vmem:[%s2163_s5] sm:$0xff] }
   0x7   :  { %v145_v15 = vand.u32 4294901760, %v144_v12  ;;  %v558_v20 = vsub.f32 %v486_v8, %v557_v14  ;;  %v1974_v42 = vand.u32 4294901760, %v951_v38  ;;  %v1075_v46 = vand.u32 4294901760, %v1971_v41 }
   0x8   :  { %v104_v16 = vand.u32 4294901760, %v103_v13  ;;  %v599_v17 = vsub.f32 %v489_v9, %v522_v11  ;;  %v1062_v39 = vsub.f32 %v1946_v32, %v1061_v35  ;;  %v1069_v45 = vsub.f32 %v1957_v36, %v1068_v40 }
   0x9   :  { %v146_v18 = vsub.f32 %v144_v12, %v145_v15  ;;  %v559_v24 = vand.u32 4294901760, %v558_v20  ;;  %v1985_v47 = vsub.f32 %v951_v38, %v1974_v42  ;;  %v1076_v51 = vsub.f32 %v1971_v41, %v1075_v46 }
   0xa   :  { %v105_v19 = vsub.f32 %v103_v13, %v104_v16  ;;  %v600_v23 = vand.u32 4294901760, %v599_v17  ;;  %v1063_v44 = vand.u32 4294901760, %v1062_v39  ;;  %v1070_v50 = vand.u32 4294901760, %v1069_v45 }
   0xb   :  { %v147_v21 = vand.u32 4294901760, %v146_v18  ;;  %v560_v26 = vsub.f32 %v558_v20, %v559_v24  ;;  %v1996_v52 = vand.u32 4294901760, %v949_v49  ;;  %v1082_v53 = vand.u32 4294901760, %v1985_v47 }
   0xc   :  { %v106_v22 = vand.u32 4294901760, %v105_v19  ;;  %v601_v25 = vsub.f32 %v599_v17, %v600_v23  ;;  %v2002_v54 = vsub.f32 %v950_v43, %v1987_v48  ;;  %v1077_v56 = vand.u32 4294901760, %v1076_v51 }
   0xd   :  { %1670 = vmatpush3.msra.mxu1 %v147_v21  ;;  %v561_v28 = vand.u32 4294901760, %v560_v26  ;;  %v2009_v57 = vsub.f32 %v949_v49, %v1996_v52  ;;  %v2011_v58 = vand.u32 4294901760, %v948_v55  ;;  %v1083_v59 = vsub.f32 %v1985_v47, %v1082_v53 }
   0xe   :  { %1667 = vmatmul.mubr.f32.vlgmr.msra.gmra.mxu0 %v106_v22  ;;  %1672 = vmatmul.mubr.f32.vlgmr.msra.gmra.mxu1 %v102_v10  ;;  %v602_v27 = vand.u32 4294901760, %v601_v25  ;;  %v1089_v60 = vand.u32 4294901760, %v2002_v54  ;;  %v2027_v0 = vand.u32 4294901760, %v947_v61 }
   0xf   :  { %1675 = vmatpush3.msra.mxu0 %v144_v12  ;;  %1679 = vmatprep.subr.mxu1 %v1841_v2  ;;  %v1096_v62 = vand.u32 4294901760, %v2009_v57  ;;  %v2025_v63 = vsub.f32 %v948_v55, %v2011_v58  ;;  %v1084_v1 = vand.u32 4294901760, %v1083_v59 }
  0x10   :  { %1680 = vmatpush3.msra.mxu1 %v67_v6  ;;  %1676 = vmatprep.mubr.msk.f32.mxu0 %vm1842_vm1, %v1841_v2  ;;  %v1090_v3 = vsub.f32 %v2002_v54, %v1089_v60 }
  0x11   :  { %1684 = vmatprep.subr.mxu0 %v1841_v2  ;;  %1681 = vmatprep.mubr.msk.f32.mxu1 %vm1842_vm1, %v1841_v2  ;;  %v1097_v4 = vsub.f32 %v2009_v57, %v1096_v62  ;;  %v1103_v5 = vand.u32 4294901760, %v2025_v63 }
  0x12   :  { %1677 = vmatmul.mubr.f32.vlgmr.msra.gmra.mxu0 %v103_v13  ;;  %1682 = vmatmul.mubr.f32.vlgmr.msra.gmra.mxu1 %v104_v16  ;;  %v1091_v7 = vand.u32 4294901760, %v1090_v3  ;;  %v1579_v3 = vld [vmem:[%s2162_s4] ss:$0 sm:$0xff] }
  0x13   :  { %1685 = vmatpush3.msra.mxu0 %v145_v15  ;;  %1689 = vmatprep.subr.mxu1 %v1841_v2  ;;  %v1098_v8 = vand.u32 4294901760, %v1097_v4  ;;  %v1104_v9 = vsub.f32 %v2025_v63, %v1103_v5 }
  0x14   :  { %1690 = vmatpush3.msra.mxu1 %v67_v6  ;;  %1686 = vmatprep.mubr.msk.f32.mxu0 %vm1842_vm1, %v1841_v2  ;;  %v2040_v6 = vsub.f32 %v947_v61, %v2027_v0 }
  0x15   :  { %1694 = vmatprep.subr.mxu0 %v1841_v2  ;;  %1691 = vmatprep.mubr.msk.f32.mxu1 %vm1842_vm1, %v1841_v2 }
  0x16   :  { %1687 = vmatmul.mubr.f32.vlgmr.msra.gmra.mxu0 %v102_v10  ;;  %1692 = vmatmul.mubr.f32.vlgmr.msra.gmra.mxu1 %v102_v10  ;;  %v1110_v10 = vand.u32 4294901760, %v2040_v6 }
  0x17   :  { %1695 = vmatpush3.msra.mxu0 %v522_v11  ;;  %1699 = vmatprep.subr.mxu1 %v1841_v2 }
  0x18   :  { %1700 = vmatpush3.msra.mxu1 %v602_v27  ;;  %1696 = vmatprep.mubr.msk.f32.mxu0 %vm1842_vm1, %v1841_v2  ;;  %v1111_v12 = vsub.f32 %v2040_v6, %v1110_v10 }
  0x19   :  { %1704 = vmatprep.subr.mxu0 %v1841_v2  ;;  %1701 = vmatprep.mubr.msk.f32.mxu1 %vm1842_vm1, %v1841_v2 }
  0x1a   :  { %1697 = vmatmul.mubr.f32.vlgmr.msra.gmra.mxu0 %v561_v28  ;;  %1702 = vmatmul.mubr.f32.vlgmr.msra.gmra.mxu1 %v557_v14  ;;  %v1112_v13 = vand.u32 4294901760, %v1111_v12 }
  0x1b   :  { %1705 = vmatpush3.msra.mxu0 %v599_v17  ;;  %1709 = vmatprep.subr.mxu1 %v1841_v2 }
  0x1c   :  { %1710 = vmatpush3.msra.mxu1 %v522_v11  ;;  %1706 = vmatprep.mubr.msk.f32.mxu0 %vm1842_vm1, %v1841_v2 }
  0x1d   :  { %1714 = vmatprep.subr.mxu0 %v1841_v2  ;;  %1711 = vmatprep.mubr.msk.f32.mxu1 %vm1842_vm1, %v1841_v2 }
  0x1e   :  { %1707 = vmatmul.mubr.f32.vlgmr.msra.gmra.mxu0 %v558_v20  ;;  %1712 = vmatmul.mubr.f32.vlgmr.msra.gmra.mxu1 %v559_v24 }
  0x1f   :  { %1715 = vmatpush3.msra.mxu0 %v600_v23  ;;  %1719 = vmatprep.subr.mxu1 %v1841_v2 }
  0x20   :  { %1720 = vmatpush3.msra.mxu1 %v522_v11  ;;  %1716 = vmatprep.mubr.msk.f32.mxu0 %vm1842_vm1, %v1841_v2  ;;  %v1105_v11 = vand.u32 4294901760, %v1104_v9 }
  0x21   :  { %1721 = vmatprep.mubr.msk.f32.mxu1 %vm1842_vm1, %v1841_v2  ;;  %1743 = vmatprep.subr.mxu1 %v1841_v2 }
  0x22   :  { %1717 = vmatmul.mubr.f32.vlgmr.msra.gmra.mxu0 %v557_v14  ;;  %1722 = vmatmul.mubr.f32.vlgmr.msra.gmra.mxu1 %v557_v14 }
  0x23   :  { %1724 = vmatprep.subr.mxu0 %v1841_v2  ;;  %1759 = vmatprep.mubr.msk.f32.mxu1 %vm1842_vm1, %v1841_v2 }
  0x24   :  { %1740 = vmatprep.mubr.msk.f32.mxu0 %vm1842_vm1, %v1841_v2  ;;  %1725 = vmatpush3.msra.mxu0 %v1940_v30 }
  0x25   :  { %1726 = vmatprep.subr.mxu0 %v1841_v2  ;;  %1744 = vmatpush3.msra.mxu1 %v1063_v44 }
  0x26   :  { %1727 = vmatpush3.msra.mxu0 %v1948_v33  ;;  %1745 = vmatprep.subr.mxu1 %v1841_v2 }
  0x27   :  { %1728 = vmatprep.subr.mxu0 %v1841_v2  ;;  %1746 = vmatpush3.msra.mxu1 %v1070_v50 }
  0x28   :  { %1729 = vmatpush3.msra.mxu0 %v1959_v37  ;;  %1747 = vmatprep.subr.mxu1 %v1841_v2 }
  0x29   :  { %1730 = vmatprep.subr.mxu0 %v1841_v2  ;;  %1748 = vmatpush3.msra.mxu1 %v1077_v56 }
  0x2a   :  { %1731 = vmatpush3.msra.mxu0 %v1974_v42  ;;  %1749 = vmatprep.subr.mxu1 %v1841_v2 }
  0x2b   :  { %1732 = vmatprep.subr.mxu0 %v1841_v2  ;;  %1750 = vmatpush3.msra.mxu1 %v1084_v1 }
  0x2c   :  { %1733 = vmatpush3.msra.mxu0 %v1987_v48  ;;  %1751 = vmatprep.subr.mxu1 %v1841_v2 }
  0x2d   :  { %1734 = vmatprep.subr.mxu0 %v1841_v2  ;;  %1752 = vmatpush3.msra.mxu1 %v1091_v7 }
  0x2e   :  { %1735 = vmatpush3.msra.mxu0 %v1996_v52  ;;  %1753 = vmatprep.subr.mxu1 %v1841_v2 }
  0x2f   :  { %1736 = vmatprep.subr.mxu0 %v1841_v2  ;;  %1754 = vmatpush3.msra.mxu1 %v1098_v8 }
  0x30   :  { %1737 = vmatpush3.msra.mxu0 %v2011_v58  ;;  %1755 = vmatprep.subr.mxu1 %v1841_v2 }
  0x31   :  { %1738 = vmatprep.subr.mxu0 %v1841_v2  ;;  %1756 = vmatpush3.msra.mxu1 %v1105_v11 }
  0x32   :  { %1739 = vmatpush3.msra.mxu0 %v2027_v0  ;;  %1757 = vmatprep.subr.mxu1 %v1841_v2 }
  0x33   :  { %1762 = vmatprep.subr.mxu0 %v1841_v2  ;;  %1758 = vmatpush3.msra.mxu1 %v1112_v13 }
  0x34   :  { %1781 = vmatprep.subr.mxu1 %v1841_v2 }
  0xce   :  { %v108_v14 = vpop.f32.mrf.mxu0  ;;  %v184_v15 = vpop.f32.mrf.mxu1 }
  0xcf   :  { %v185_v16 = vadd.f32 %v184_v15, %v108_v14 }
  0xd0   :  { %v1668_v17 = vpop.f32.mrf.mxu0  ;;  %v1673_v18 = vpop.f32.mrf.mxu1 }
  0xd2   :  { %v258_v19 = vpop.f32.mrf.mxu0  ;;  %v332_v20 = vpop.f32.mrf.mxu1 }
  0xd3   :  { %v259_v21 = vadd.f32 %v258_v19, %v185_v16 }
  0xd4   :  { %v1678_v22 = vpop.f32.mrf.mxu0  ;;  %v1683_v23 = vpop.f32.mrf.mxu1 }
  0xd5   :  { %v333_v24 = vadd.f32 %v332_v20, %v259_v21 }
  0xd6   :  { %v406_v25 = vpop.f32.mrf.mxu0  ;;  %v478_v26 = vpop.f32.mrf.mxu1 }
  0xd7   :  { %v407_v27 = vadd.f32 %v406_v25, %v333_v24 }
  0xd8   :  { %v1688_v28 = vpop.f32.mrf.mxu0  ;;  %v1693_v29 = vpop.f32.mrf.mxu1 }
  0xd9   :  { %v2057_v31 = vadd.f32 %v478_v26, %v407_v27 }
  0xda   :  { %v563_v34 = vpop.f32.mrf.mxu0  ;;  %v639_v38 = vpop.f32.mrf.mxu1 }
  0xdb   :  { %v640_v39 = vadd.f32 %v639_v38, %v563_v34 }
  0xdc   :  { %v1698_v43 = vpop.f32.mrf.mxu0  ;;  %v1703_v44 = vpop.f32.mrf.mxu1 }
  0xde   :  { %v713_v45 = vpop.f32.mrf.mxu0  ;;  %v787_v49 = vpop.f32.mrf.mxu1 }
  0xdf   :  { %v714_v50 = vadd.f32 %v713_v45, %v640_v39 }
  0xe0   :  { %v1708_v51 = vpop.f32.mrf.mxu0  ;;  %v1713_v55 = vpop.f32.mrf.mxu1 }
  0xe1   :  { %v788_v56 = vadd.f32 %v787_v49, %v714_v50 }
  0xe2   :  { %v861_v59 = vpop.f32.mrf.mxu0  ;;  %v933_v61 = vpop.f32.mrf.mxu1 }
  0xe3   :  { %v862_v1 = vadd.f32 %v861_v59, %v788_v56 }
  0xe4   :  { %v1718_v4 = vpop.f32.mrf.mxu0  ;;  %v1723_v7 = vpop.f32.mrf.mxu1 }
  0xe5   :  { %v934_v8 = vadd.f32 %v933_v61, %v862_v1 }
  0xe7   :  { %vm944_vm4 = vcmp.eq.f32.partialorder %v934_v8, %v1579_v3 }
  0xe8   :  { %v2063_v9 = vsel %vm944_vm4, 1.0, %v1841_v2 }
  0xe9   :  { %v957_v11 = vsel %vm955_vm3, %v2063_v9, 0  ;;  %1760 = vmatmul.mubr.msk.f32.vlgmr.msra.gmra.mxu1 %vm955_vm3, %v2063_v9 }
  0xea   :  { %v1033_v12 = vsub.f32 %v957_v11, %v957_v11  ;;  %1782 = vmatpush3.msra.mxu1 %v1940_v30  ;;  %1797 = vmatprep.mubr.msk.f32.mxu1 %vm1842_vm1, %v1841_v2 }
  0xeb   :  { %1783 = vmatprep.subr.mxu1 %v1841_v2 }
  0xec   :  { %1784 = vmatpush3.msra.mxu1 %v1948_v33  ;;  %v1034_v13 = vand.u32 4294901760, %v1033_v12 }
  0xed   :  { %1785 = vmatprep.subr.mxu1 %v1841_v2 }
  0xee   :  { %1786 = vmatpush3.msra.mxu1 %v1959_v37  ;;  %v1035_v14 = vsub.f32 %v1033_v12, %v1034_v13 }
  0xef   :  { %1787 = vmatprep.subr.mxu1 %v1841_v2 }
  0xf0   :  { %1788 = vmatpush3.msra.mxu1 %v1974_v42  ;;  %v1036_v15 = vand.u32 4294901760, %v1035_v14 }
  0xf1   :  { %1789 = vmatprep.subr.mxu1 %v1841_v2 }
  0xf2   :  { %1790 = vmatpush3.msra.mxu1 %v1987_v48  ;;  %1741 = vmatmul.mubr.f32.vlgmr.msra.gmra.mxu0 %v1036_v15 }
  0xf3   :  { %1763 = vmatpush3.msra.mxu0 %v1946_v32  ;;  %1791 = vmatprep.subr.mxu1 %v1841_v2 }
  0xf4   :  { %1764 = vmatprep.subr.mxu0 %v1841_v2  ;;  %1792 = vmatpush3.msra.mxu1 %v1996_v52 }
  0xf5   :  { %1765 = vmatpush3.msra.mxu0 %v1957_v36  ;;  %1793 = vmatprep.subr.mxu1 %v1841_v2 }
  0xf6   :  { %1766 = vmatprep.subr.mxu0 %v1841_v2  ;;  %1794 = vmatpush3.msra.mxu1 %v2011_v58 }
  0xf7   :  { %1767 = vmatpush3.msra.mxu0 %v1971_v41  ;;  %1795 = vmatprep.subr.mxu1 %v1841_v2 }
  0xf8   :  { %1768 = vmatprep.subr.mxu0 %v1841_v2  ;;  %1796 = vmatpush3.msra.mxu1 %v2027_v0 }
  0xf9   :  { %1769 = vmatpush3.msra.mxu0 %v1985_v47  ;;  %1798 = vmatmul.mubr.f32.vlgmr.msra.gmra.mxu1 %v1034_v13 }
  0xfa   :  { %1819 = vmatprep.subr.mxu1 %v1841_v2  ;;  %1770 = vmatprep.subr.mxu0 %v1841_v2 }
  0xfb   :  { %1820 = vmatpush3.msra.mxu1 %v1940_v30  ;;  %1771 = vmatpush3.msra.mxu0 %v2002_v54  ;;  %v1496_v54 = vld [vmem:[%s2164_s6] sm:$0x3] }
  0xfc   :  { %1821 = vmatprep.subr.mxu1 %v1841_v2  ;;  %1772 = vmatprep.subr.mxu0 %v1841_v2 }
  0xfd   :  { %1822 = vmatpush3.msra.mxu1 %v1948_v33  ;;  %1773 = vmatpush3.msra.mxu0 %v2009_v57 }
  0xfe   :  { %1823 = vmatprep.subr.mxu1 %v1841_v2  ;;  %1774 = vmatprep.subr.mxu0 %v1841_v2 }
  0xff   :  { %1824 = vmatpush3.msra.mxu1 %v1959_v37  ;;  %1775 = vmatpush3.msra.mxu0 %v2025_v63  ;;  %v482_v63 = vmax.f32 %v2057_v31, 0.0 }
 0x100   :  { %1825 = vmatprep.subr.mxu1 %v1841_v2  ;;  %1776 = vmatprep.subr.mxu0 %v1841_v2 }
 0x101   :  { %1826 = vmatpush3.msra.mxu1 %v1974_v42  ;;  %1777 = vmatpush3.msra.mxu0 %v2040_v6  ;;  %v1498_v42 = vlaneseq }
 0x102   :  { %1778 = vmatprep.mubr.msk.f32.mxu0 %vm1842_vm1, %v1841_v2  ;;  %1827 = vmatprep.subr.mxu1 %v1841_v2 }
 0x103   :  { %1779 = vmatmul.mubr.f32.vlgmr.msra.gmra.mxu0 %v1033_v12  ;;  %1800 = vmatprep.subr.mxu0 %v1841_v2  ;;  %v1499_v47 = vshrl.u32 %v1498_v42, 7 }
 0x104   :  { %1828 = vmatpush3.msra.mxu1 %v1987_v48  ;;  %1801 = vmatpush3.msra.mxu0 %v1061_v35 }
 0x105   :  { %1829 = vmatprep.subr.mxu1 %v1841_v2  ;;  %1802 = vmatprep.subr.mxu0 %v1841_v2  ;;  %v1504_v57 = vsub.s32 1, %v1499_v47 }
 0x106   :  { %1830 = vmatpush3.msra.mxu1 %v1996_v52  ;;  %1803 = vmatpush3.msra.mxu0 %v1068_v40 }
 0x107   :  { %1831 = vmatprep.subr.mxu1 %v1841_v2  ;;  %1804 = vmatprep.subr.mxu0 %v1841_v2 }
 0x108   :  { %1832 = vmatpush3.msra.mxu1 %v2011_v58  ;;  %1805 = vmatpush3.msra.mxu0 %v1075_v46 }
 0x109   :  { %1833 = vmatprep.subr.mxu1 %v1841_v2  ;;  %1806 = vmatprep.subr.mxu0 %v1841_v2 }
 0x10a   :  { %1834 = vmatpush3.msra.mxu1 %v2027_v0  ;;  %1835 = vmatprep.mubr.msk.f32.mxu1 %vm1842_vm1, %v1841_v2 }
 0x10b   :  { %1807 = vmatpush3.msra.mxu0 %v1082_v53  ;;  %1836 = vmatmul.mubr.msk.f32.vlgmr.msra.gmra.mxu1 %vm955_vm3, %v2063_v9  ;;  %v1500_v53 = vsub.s32 0, %v1499_v47 }
 0x10c   :  { %1808 = vmatprep.subr.mxu0 %v1841_v2  ;;  %1816 = vmatprep.mubr.msk.f32.mxu0 %vm1842_vm1, %v1841_v2 }
 0x10d   :  { %1809 = vmatpush3.msra.mxu0 %v1089_v60  ;;  %v1501_v60 = vrot.slane %v1496_v54, %v1500_v53 }
 0x10e   :  { %1810 = vmatprep.subr.mxu0 %v1841_v2 }
 0x10f   :  { %1811 = vmatpush3.msra.mxu0 %v1096_v62  ;;  %v1508_v16 = vadd.f32 %v1501_v60, %v482_v63 }
 0x110   :  { %1812 = vmatprep.subr.mxu0 %v1841_v2 }
 0x111   :  { %1813 = vmatpush3.msra.mxu0 %v1103_v5  ;;  %v1505_v5 = vrot.slane %v1496_v54, %v1504_v57 }
 0x112   :  { %1814 = vmatprep.subr.mxu0 %v1841_v2 }
 0x113   :  { %1815 = vmatpush3.msra.mxu0 %v1110_v10 }
 0x114   :  { %1817 = vmatmul.mubr.msk.f32.vlgmr.msra.gmra.mxu0 %vm955_vm3, %v2063_v9 }
 0x1a9   :  { %v1149_v30 = vpop.f32.mrf.mxu1 }
 0x1ab   :  { %v1761_v32 = vpop.f32.mrf.mxu1 }
 0x1b2   :  { %v1038_v33 = vpop.f32.mrf.mxu0 }
 0x1b3   :  { %v1150_v48 = vadd.f32 %v1149_v30, %v1038_v33 }
 0x1b4   :  { %v1742_v35 = vpop.f32.mrf.mxu0 }
 0x1b9   :  { %v1318_v36 = vpop.f32.mrf.mxu1 }
 0x1bb   :  { %v1799_v37 = vpop.f32.mrf.mxu1 }
 0x1c3   :  { %v1237_v40 = vpop.f32.mrf.mxu0 }
 0x1c4   :  { %v1238_v2 = vadd.f32 %v1237_v40, %v1150_v48 }
 0x1c5   :  { %v1780_v41 = vpop.f32.mrf.mxu0 }
 0x1c6   :  { %v1319_v58 = vadd.f32 %v1318_v36, %v1238_v2 }
 0x1cb   :  { %v1492_v46 = vpop.f32.mrf.mxu1 }
 0x1cd   :  { %v1837_v52 = vpop.f32.mrf.mxu1 }
 0x1d4   :  { %v1413_v62 = vpop.f32.mrf.mxu0 }
 0x1d5   :  { %v1414_v0 = vadd.f32 %v1413_v62, %v1319_v58 }
 0x1d6   :  { %v1818_v6 = vpop.f32.mrf.mxu0 }
 0x1d7   :  { %v1493_v10 = vadd.f32 %v1492_v46, %v1414_v0 }
 0x1d9   :  { %v1509_v17 = vadd.f32 %v1505_v5, %v1493_v10 }
 0x1db   :  { %v1512_v18 = vcombine.low %v1508_v16, %v1509_v17 }
 0x1dd   :  { %1584 = vst.sshfl [vmem:[#allocation2] sm:$0x33 pattern:$0x76325410] %v1512_v18 }
 0x1e4   :  { %v1556_v19 = vld [vmem:[#allocation2] sm:$0xf] }
 0x1e5   :  { %1557 = vst [vmem:[%s2165_s7] sm:$0xf] %v1556_v19 }

</bundles_post_ra>
